<compile_context>
chip_gen: v7x
topology: tpu7x:2x2x1
jax: 0.10.0
libtpu: 0.0.40
codegen_flags: <defaults>
</compile_context>

<pallas_src>
import jax
import jax.numpy as jnp
from jax import lax
from jax.experimental import pallas as pl
from jax.experimental.pallas import tpu as pltpu

_LANES = 128


def _round_up(x, m):
    return (x + m - 1) // m * m


def _make_kernel(tb, tile_rows, acc_rows, tail_rows, need_mask):
    """Builds the partial-sums kernel for static tiling parameters.

    Block shapes:
      y1_ref / y2_ref : (tb, tile_rows, 128) input tiles
      out_ref         : (1, tb, 4) per-row totals [dot, |y1|^2, |y2|^2, smooth_l1]
      *_acc           : (tb, acc_rows, 128) f32 accumulators (acc_rows = 8 or 1)
    """
    groups = tile_rows // 8 if tile_rows % 8 == 0 else None

    def fold(p):
        # (tb, tile_rows, 128) -> (tb, acc_rows, 128); vreg-aligned adds when
        # tile_rows is a multiple of 8 (the common, multi-tile case).
        if groups is not None:
            return jnp.sum(p.reshape(tb, groups, 8, _LANES), axis=1)
        return jnp.sum(p, axis=1, keepdims=True)

    def kernel(y1_ref, y2_ref, out_ref, dot_acc, n1_acc, n2_acc, l1_acc):
        j = pl.program_id(1)
        nj = pl.num_programs(1)

        @pl.when(j == 0)
        def _():
            dot_acc[...] = jnp.zeros_like(dot_acc)
            n1_acc[...] = jnp.zeros_like(n1_acc)
            n2_acc[...] = jnp.zeros_like(n2_acc)
            l1_acc[...] = jnp.zeros_like(l1_acc)

        a = y1_ref[...].astype(jnp.float32)
        b = y2_ref[...].astype(jnp.float32)

        def accumulate(aa, bb):
            d = aa - bb
            ad = jnp.abs(d)
            sl1 = jnp.where(ad < 1.0, 0.5 * d * d, ad - 0.5)  # SmoothL1, beta=1.0
            dot_acc[...] += fold(aa * bb)
            n1_acc[...] += fold(aa * aa)
            n2_acc[...] += fold(bb * bb)
            l1_acc[...] += fold(sl1)

        if need_mask:
            # Only the last feature tile is partial; mask its garbage rows
            # (masking inputs keeps every partial exact and NaN-free).
            @pl.when(j != nj - 1)
            def _():
                accumulate(a, b)

            @pl.when(j == nj - 1)
            def _():
                row = lax.broadcasted_iota(jnp.int32, (tb, tile_rows, _LANES), 1)
                valid = row < tail_rows
                zero = jnp.zeros_like(a)
                accumulate(jnp.where(valid, a, zero), jnp.where(valid, b, zero))
        else:
            accumulate(a, b)

        @pl.when(j == nj - 1)
        def _():
            # XLU is idle in this kernel; the final per-row reductions are free.
            def row_total(acc):
                per_lane = jnp.sum(acc[...], axis=1)               # (tb, 128)
                return jnp.sum(per_lane, axis=-1, keepdims=True)   # (tb, 1)

            out_ref[:, :, 0:1] = row_total(dot_acc)[None]
            out_ref[:, :, 1:2] = row_total(n1_acc)[None]
            out_ref[:, :, 2:3] = row_total(n2_acc)[None]
            out_ref[:, :, 3:4] = row_total(l1_acc)[None]

    return kernel


def mixed_cosine_l1_loss(y1, y2, alpha, beta, *, max_tile_rows=1024,
                         target_rows=1024):
    """loss = alpha * CosineEmbeddingLoss(y1, y2, +1) + beta * SmoothL1Loss(y1, y2)."""
    assert y1.shape == y2.shape, (y1.shape, y2.shape)
    B = y1.shape[0]
    y1f = y1.reshape(B, -1)
    y2f = y2.reshape(B, -1)
    D = y1f.shape[1]
    itemsize = jnp.dtype(y1f.dtype).itemsize
    sub = 16 if itemsize == 2 else 8

    # Lane raggedness: pad only to the next multiple of 128 (zero pad is exact
    # for all four partials); no pad at all when D is already lane-aligned.
    D128 = _round_up(D, _LANES)
    if D128 != D:
        y1f = jnp.pad(y1f, ((0, 0), (0, D128 - D)))
        y2f = jnp.pad(y2f, ((0, 0), (0, D128 - D)))
    R = D128 // _LANES

    # v7x megacore fallback for B == 1: split the row into two additive
    # pseudo-rows (free reshape), recombined in the wrapper.
    split = 1
    if B == 1 and R % 2 == 0 and R >= 2 * sub:
        split = 2
    B_rows = B * split
    R_eff = R // split

    y1r = y1f.reshape(B_rows, R_eff, _LANES)
    y2r = y2f.reshape(B_rows, R_eff, _LANES)

    # Balanced feature tiles, multiple of `sub`; ragged tail handled in-kernel.
    num_tiles = pl.cdiv(R_eff, max_tile_rows)
    tile_rows = _round_up(pl.cdiv(R_eff, num_tiles), sub)
    if tile_rows >= R_eff:
        tile_rows = R_eff           # single full-extent tile (always legal)
        num_tiles = 1
    else:
        num_tiles = pl.cdiv(R_eff, tile_rows)
    tail_rows = R_eff - (num_tiles - 1) * tile_rows
    need_mask = tail_rows != tile_rows

    # Fuse batch rows so each grid step carries ~target_rows 128-lane rows
    # (amortizes per-step overhead for small per-row work).
    tb = max(1, min(B_rows, target_rows // max(R_eff, 1)))
    num_bb = pl.cdiv(B_rows, tb)

    acc_rows = 8 if tile_rows % 8 == 0 else 1
    kernel = _make_kernel(tb, tile_rows, acc_rows, tail_rows, need_mask)

    in_spec = pl.BlockSpec((tb, tile_rows, _LANES), lambda i, j: (i, j, 0))
    out_spec = pl.BlockSpec((1, tb, 4), lambda i, j: (i, 0, 0))

    partials = pl.pallas_call(
        kernel,
        out_shape=jax.ShapeDtypeStruct((num_bb, tb, 4), jnp.float32),
        grid_spec=pltpu.PrefetchScalarGridSpec(
            num_scalar_prefetch=0,
            grid=(num_bb, num_tiles),
            in_specs=[in_spec, in_spec],
            out_specs=out_spec,
            scratch_shapes=[pltpu.VMEM((tb, acc_rows, _LANES), jnp.float32)] * 4,
        ),
        compiler_params=pltpu.CompilerParams(
            dimension_semantics=("parallel", "arbitrary"),
            vmem_limit_bytes=32 * 1024 * 1024,
        ),
        cost_estimate=pl.CostEstimate(
            flops=10 * B_rows * R_eff * _LANES,
            transcendentals=0,
            bytes_accessed=2 * B_rows * R_eff * _LANES * itemsize
                           + num_bb * tb * 4 * 4,
        ),
    )(y1r, y2r)

    # Tiny final combine in plain JAX (needs all batch rows, so it can't live
    # inside the batch-parallel kernel): (B, 4) scalars only.
    partials = partials.reshape(num_bb * tb, 4)[:B_rows]
    if split > 1:
        partials = partials.reshape(B, split, 4).sum(axis=1)
    dot, n1sq, n2sq, l1 = (partials[:, 0], partials[:, 1],
                           partials[:, 2], partials[:, 3])
    eps = 1e-12                                       # ATen cosine_embedding_loss EPSILON
    cos = dot / jnp.sqrt((n1sq + eps) * (n2sq + eps))
    cos_loss = jnp.mean(1.0 - cos)                    # target = +1, margin = 0
    l1_loss = jnp.sum(l1) / (B * D)                   # mean over true (unpadded) elems
    return alpha * cos_loss + beta * l1_loss


def _reference(y1, y2, alpha, beta):
    B = y1.shape[0]
    a = y1.reshape(B, -1).astype(jnp.float32)
    b = y2.reshape(B, -1).astype(jnp.float32)
    eps = 1e-12
    dot = jnp.sum(a * b, axis=-1)
    n1sq = jnp.sum(a * a, axis=-1)
    n2sq = jnp.sum(b * b, axis=-1)
    cos_loss = jnp.mean(1.0 - dot / jnp.sqrt((n1sq + eps) * (n2sq + eps)))
    d = a - b
    ad = jnp.abs(d)
    l1_loss = jnp.mean(jnp.where(ad < 1.0, 0.5 * d * d, ad - 0.5))
    return alpha * cos_loss + beta * l1_loss


if __name__ == "__main__":
    # MixedCosineL1Loss(alpha, beta) hyperparameters (deterministic, in-script).
    alpha, beta = 0.7, 0.3

    key = jax.random.PRNGKey(0)
    k1, k2 = jax.random.split(key)
    # NCHW, as a PyTorch model head would produce.
    x_shape = (2, 4, 16, 16)
    y1 = jax.random.normal(k1, x_shape, dtype=jnp.float32)
    y2 = jax.random.normal(k2, x_shape, dtype=jnp.float32)

    loss = mixed_cosine_l1_loss(y1, y2, alpha, beta)
    loss = jax.block_until_ready(loss)

    ref = _reference(y1, y2, alpha, beta)
    assert jnp.allclose(loss, ref, rtol=1e-5, atol=1e-5), (loss, ref)

    print("KERNEL_OK")
</pallas_src>

<mosaic_0001>
module attributes {stable_mosaic.version = 11 : i64} {
  func.func @kernel(%arg0: i32, %arg1: i32, %arg2: memref<2x8x128xf32, #tpu.memory_space<vmem>>, %arg3: memref<2x8x128xf32, #tpu.memory_space<vmem>>, %arg4: memref<1x2x4xf32, #tpu.memory_space<vmem>>, %arg5: memref<2x8x128xf32, #tpu.memory_space<vmem>>, %arg6: memref<2x8x128xf32, #tpu.memory_space<vmem>>, %arg7: memref<2x8x128xf32, #tpu.memory_space<vmem>>, %arg8: memref<2x8x128xf32, #tpu.memory_space<vmem>>) attributes {dimension_semantics = [#tpu.dimension_semantics<parallel>, #tpu.dimension_semantics<arbitrary>], iteration_bounds = array<i64: 1, 1>, scalar_prefetch = 0 : i64, scratch_operands = 4 : i64, tpu.core_type = #tpu.core_type<tc>, window_params = [{transform_indices = @transform_0, window_bounds = array<i64: 2, 8, 128>}, {transform_indices = @transform_1, window_bounds = array<i64: 2, 8, 128>}, {transform_indices = @transform_2, window_bounds = array<i64: 1, 2, 4>}]} {
    %c0_i32 = arith.constant 0 : i32
    %0 = arith.cmpi eq, %arg1, %c0_i32 : i32
    %1 = arith.extui %0 : i1 to i32
    %c0_i32_0 = arith.constant 0 : i32
    %2 = arith.cmpi ne, %1, %c0_i32_0 : i32
    scf.if %2 {
      %cst_38 = arith.constant 0.000000e+00 : f32
      %41 = vector.broadcast %cst_38 : f32 to vector<2x8x128xf32>
      %c0_39 = arith.constant 0 : index
      %c0_40 = arith.constant 0 : index
      %c0_41 = arith.constant 0 : index
      %42 = vector.load %arg5[%c0_39, %c0_40, %c0_41] : memref<2x8x128xf32, #tpu.memory_space<vmem>>, vector<2x8x128xf32>
      tpu.vector_store %arg5[%c0_39, %c0_40, %c0_41], %41 {strides = array<i32>} : memref<2x8x128xf32, #tpu.memory_space<vmem>>, vector<2x8x128xf32>,
      %cst_42 = arith.constant 0.000000e+00 : f32
      %43 = vector.broadcast %cst_42 : f32 to vector<2x8x128xf32>
      %c0_43 = arith.constant 0 : index
      %c0_44 = arith.constant 0 : index
      %c0_45 = arith.constant 0 : index
      %44 = vector.load %arg6[%c0_43, %c0_44, %c0_45] : memref<2x8x128xf32, #tpu.memory_space<vmem>>, vector<2x8x128xf32>
      tpu.vector_store %arg6[%c0_43, %c0_44, %c0_45], %43 {strides = array<i32>} : memref<2x8x128xf32, #tpu.memory_space<vmem>>, vector<2x8x128xf32>,
      %cst_46 = arith.constant 0.000000e+00 : f32
      %45 = vector.broadcast %cst_46 : f32 to vector<2x8x128xf32>
      %c0_47 = arith.constant 0 : index
      %c0_48 = arith.constant 0 : index
      %c0_49 = arith.constant 0 : index
      %46 = vector.load %arg7[%c0_47, %c0_48, %c0_49] : memref<2x8x128xf32, #tpu.memory_space<vmem>>, vector<2x8x128xf32>
      tpu.vector_store %arg7[%c0_47, %c0_48, %c0_49], %45 {strides = array<i32>} : memref<2x8x128xf32, #tpu.memory_space<vmem>>, vector<2x8x128xf32>,
      %cst_50 = arith.constant 0.000000e+00 : f32
      %47 = vector.broadcast %cst_50 : f32 to vector<2x8x128xf32>
      %c0_51 = arith.constant 0 : index
      %c0_52 = arith.constant 0 : index
      %c0_53 = arith.constant 0 : index
      %48 = vector.load %arg8[%c0_51, %c0_52, %c0_53] : memref<2x8x128xf32, #tpu.memory_space<vmem>>, vector<2x8x128xf32>
      tpu.vector_store %arg8[%c0_51, %c0_52, %c0_53], %47 {strides = array<i32>} : memref<2x8x128xf32, #tpu.memory_space<vmem>>, vector<2x8x128xf32>,
    } else {
    }
    %c0 = arith.constant 0 : index
    %c0_1 = arith.constant 0 : index
    %c0_2 = arith.constant 0 : index
    %3 = vector.load %arg2[%c0, %c0_1, %c0_2] : memref<2x8x128xf32, #tpu.memory_space<vmem>>, vector<2x8x128xf32>
    %c0_3 = arith.constant 0 : index
    %c0_4 = arith.constant 0 : index
    %c0_5 = arith.constant 0 : index
    %4 = vector.load %arg3[%c0_3, %c0_4, %c0_5] : memref<2x8x128xf32, #tpu.memory_space<vmem>>, vector<2x8x128xf32>
    %5 = arith.subf %3, %4 : vector<2x8x128xf32>
    %6 = math.absf %5 : vector<2x8x128xf32>
    %cst = arith.constant 1.000000e+00 : f32
    %7 = vector.broadcast %cst : f32 to vector<2x8x128xf32>
    %8 = arith.cmpf olt, %6, %7 : vector<2x8x128xf32>
    %cst_6 = arith.constant 5.000000e-01 : f32
    %9 = vector.broadcast %cst_6 : f32 to vector<2x8x128xf32>
    %10 = arith.mulf %9, %5 : vector<2x8x128xf32>
    %11 = arith.mulf %10, %5 : vector<2x8x128xf32>
    %cst_7 = arith.constant 5.000000e-01 : f32
    %12 = vector.broadcast %cst_7 : f32 to vector<2x8x128xf32>
    %13 = arith.subf %6, %12 : vector<2x8x128xf32>
    %14 = arith.select %8, %11, %13 : vector<2x8x128xi1>, vector<2x8x128xf32>
    %c0_8 = arith.constant 0 : index
    %c0_9 = arith.constant 0 : index
    %c0_10 = arith.constant 0 : index
    %15 = vector.load %arg5[%c0_8, %c0_9, %c0_10] : memref<2x8x128xf32, #tpu.memory_space<vmem>>, vector<2x8x128xf32>
    %16 = arith.mulf %3, %4 : vector<2x8x128xf32>
    %17 = vector.shape_cast %16 : vector<2x8x128xf32> to vector<2x1x8x128xf32>
    %cst_11 = arith.constant dense<0.000000e+00> : vector<2x8x128xf32>
    %18 = vector.multi_reduction <add>, %17, %cst_11 [1] : vector<2x1x8x128xf32> to vector<2x8x128xf32>
    %19 = arith.addf %15, %18 : vector<2x8x128xf32>
    %c0_12 = arith.constant 0 : index
    %c0_13 = arith.constant 0 : index
    %c0_14 = arith.constant 0 : index
    %20 = vector.load %arg5[%c0_12, %c0_13, %c0_14] : memref<2x8x128xf32, #tpu.memory_space<vmem>>, vector<2x8x128xf32>
    tpu.vector_store %arg5[%c0_12, %c0_13, %c0_14], %19 {strides = array<i32>} : memref<2x8x128xf32, #tpu.memory_space<vmem>>, vector<2x8x128xf32>,
    %c0_15 = arith.constant 0 : index
    %c0_16 = arith.constant 0 : index
    %c0_17 = arith.constant 0 : index
    %21 = vector.load %arg6[%c0_15, %c0_16, %c0_17] : memref<2x8x128xf32, #tpu.memory_space<vmem>>, vector<2x8x128xf32>
    %22 = arith.mulf %3, %3 : vector<2x8x128xf32>
    %23 = vector.shape_cast %22 : vector<2x8x128xf32> to vector<2x1x8x128xf32>
    %cst_18 = arith.constant dense<0.000000e+00> : vector<2x8x128xf32>
    %24 = vector.multi_reduction <add>, %23, %cst_18 [1] : vector<2x1x8x128xf32> to vector<2x8x128xf32>
    %25 = arith.addf %21, %24 : vector<2x8x128xf32>
    %c0_19 = arith.constant 0 : index
    %c0_20 = arith.constant 0 : index
    %c0_21 = arith.constant 0 : index
    %26 = vector.load %arg6[%c0_19, %c0_20, %c0_21] : memref<2x8x128xf32, #tpu.memory_space<vmem>>, vector<2x8x128xf32>
    tpu.vector_store %arg6[%c0_19, %c0_20, %c0_21], %25 {strides = array<i32>} : memref<2x8x128xf32, #tpu.memory_space<vmem>>, vector<2x8x128xf32>,
    %c0_22 = arith.constant 0 : index
    %c0_23 = arith.constant 0 : index
    %c0_24 = arith.constant 0 : index
    %27 = vector.load %arg7[%c0_22, %c0_23, %c0_24] : memref<2x8x128xf32, #tpu.memory_space<vmem>>, vector<2x8x128xf32>
    %28 = arith.mulf %4, %4 : vector<2x8x128xf32>
    %29 = vector.shape_cast %28 : vector<2x8x128xf32> to vector<2x1x8x128xf32>
    %cst_25 = arith.constant dense<0.000000e+00> : vector<2x8x128xf32>
    %30 = vector.multi_reduction <add>, %29, %cst_25 [1] : vector<2x1x8x128xf32> to vector<2x8x128xf32>
    %31 = arith.addf %27, %30 : vector<2x8x128xf32>
    %c0_26 = arith.constant 0 : index
    %c0_27 = arith.constant 0 : index
    %c0_28 = arith.constant 0 : index
    %32 = vector.load %arg7[%c0_26, %c0_27, %c0_28] : memref<2x8x128xf32, #tpu.memory_space<vmem>>, vector<2x8x128xf32>
    tpu.vector_store %arg7[%c0_26, %c0_27, %c0_28], %31 {strides = array<i32>} : memref<2x8x128xf32, #tpu.memory_space<vmem>>, vector<2x8x128xf32>,
    %c0_29 = arith.constant 0 : index
    %c0_30 = arith.constant 0 : index
    %c0_31 = arith.constant 0 : index
    %33 = vector.load %arg8[%c0_29, %c0_30, %c0_31] : memref<2x8x128xf32, #tpu.memory_space<vmem>>, vector<2x8x128xf32>
    %34 = vector.shape_cast %14 : vector<2x8x128xf32> to vector<2x1x8x128xf32>
    %cst_32 = arith.constant dense<0.000000e+00> : vector<2x8x128xf32>
    %35 = vector.multi_reduction <add>, %34, %cst_32 [1] : vector<2x1x8x128xf32> to vector<2x8x128xf32>
    %36 = arith.addf %33, %35 : vector<2x8x128xf32>
    %c0_33 = arith.constant 0 : index
    %c0_34 = arith.constant 0 : index
    %c0_35 = arith.constant 0 : index
    %37 = vector.load %arg8[%c0_33, %c0_34, %c0_35] : memref<2x8x128xf32, #tpu.memory_space<vmem>>, vector<2x8x128xf32>
    tpu.vector_store %arg8[%c0_33, %c0_34, %c0_35], %36 {strides = array<i32>} : memref<2x8x128xf32, #tpu.memory_space<vmem>>, vector<2x8x128xf32>,
    %c0_i32_36 = arith.constant 0 : i32
    %38 = arith.cmpi eq, %arg1, %c0_i32_36 : i32
    %39 = arith.extui %38 : i1 to i32
    %c0_i32_37 = arith.constant 0 : i32
    %40 = arith.cmpi ne, %39, %c0_i32_37 : i32
    scf.if %40 {
      %c0_38 = arith.constant 0 : index
      %c0_39 = arith.constant 0 : index
      %c0_40 = arith.constant 0 : index
      %41 = vector.load %arg5[%c0_38, %c0_39, %c0_40] : memref<2x8x128xf32, #tpu.memory_space<vmem>>, vector<2x8x128xf32>
      %cst_41 = arith.constant dense<0.000000e+00> : vector<2x128xf32>
      %42 = vector.multi_reduction <add>, %41, %cst_41 [1] : vector<2x8x128xf32> to vector<2x128xf32>
      %cst_42 = arith.constant dense<0.000000e+00> : vector<2xf32>
      %43 = vector.multi_reduction <add>, %42, %cst_42 [1] : vector<2x128xf32> to vector<2xf32>
      %44 = vector.shape_cast %43 : vector<2xf32> to vector<2x1xf32>
      %45 = vector.shape_cast %44 : vector<2x1xf32> to vector<1x2x1xf32>
      %c0_43 = arith.constant 0 : index
      %c0_44 = arith.constant 0 : index
      %c0_45 = arith.constant 0 : index
      %46 = vector.load %arg4[%c0_43, %c0_44, %c0_45] : memref<1x2x4xf32, #tpu.memory_space<vmem>>, vector<1x2x1xf32>
      tpu.vector_store %arg4[%c0_43, %c0_44, %c0_45], %45 {strides = array<i32>} : memref<1x2x4xf32, #tpu.memory_space<vmem>>, vector<1x2x1xf32>,
      %c0_46 = arith.constant 0 : index
      %c0_47 = arith.constant 0 : index
      %c0_48 = arith.constant 0 : index
      %47 = vector.load %arg6[%c0_46, %c0_47, %c0_48] : memref<2x8x128xf32, #tpu.memory_space<vmem>>, vector<2x8x128xf32>
      %cst_49 = arith.constant dense<0.000000e+00> : vector<2x128xf32>
      %48 = vector.multi_reduction <add>, %47, %cst_49 [1] : vector<2x8x128xf32> to vector<2x128xf32>
      %cst_50 = arith.constant dense<0.000000e+00> : vector<2xf32>
      %49 = vector.multi_reduction <add>, %48, %cst_50 [1] : vector<2x128xf32> to vector<2xf32>
      %50 = vector.shape_cast %49 : vector<2xf32> to vector<2x1xf32>
      %51 = vector.shape_cast %50 : vector<2x1xf32> to vector<1x2x1xf32>
      %c0_51 = arith.constant 0 : index
      %c0_52 = arith.constant 0 : index
      %c1 = arith.constant 1 : index
      %52 = vector.load %arg4[%c0_51, %c0_52, %c1] : memref<1x2x4xf32, #tpu.memory_space<vmem>>, vector<1x2x1xf32>
      tpu.vector_store %arg4[%c0_51, %c0_52, %c1], %51 {strides = array<i32>} : memref<1x2x4xf32, #tpu.memory_space<vmem>>, vector<1x2x1xf32>,
      %c0_53 = arith.constant 0 : index
      %c0_54 = arith.constant 0 : index
      %c0_55 = arith.constant 0 : index
      %53 = vector.load %arg7[%c0_53, %c0_54, %c0_55] : memref<2x8x128xf32, #tpu.memory_space<vmem>>, vector<2x8x128xf32>
      %cst_56 = arith.constant dense<0.000000e+00> : vector<2x128xf32>
      %54 = vector.multi_reduction <add>, %53, %cst_56 [1] : vector<2x8x128xf32> to vector<2x128xf32>
      %cst_57 = arith.constant dense<0.000000e+00> : vector<2xf32>
      %55 = vector.multi_reduction <add>, %54, %cst_57 [1] : vector<2x128xf32> to vector<2xf32>
      %56 = vector.shape_cast %55 : vector<2xf32> to vector<2x1xf32>
      %57 = vector.shape_cast %56 : vector<2x1xf32> to vector<1x2x1xf32>
      %c0_58 = arith.constant 0 : index
      %c0_59 = arith.constant 0 : index
      %c2 = arith.constant 2 : index
      %58 = vector.load %arg4[%c0_58, %c0_59, %c2] : memref<1x2x4xf32, #tpu.memory_space<vmem>>, vector<1x2x1xf32>
      tpu.vector_store %arg4[%c0_58, %c0_59, %c2], %57 {strides = array<i32>} : memref<1x2x4xf32, #tpu.memory_space<vmem>>, vector<1x2x1xf32>,
      %c0_60 = arith.constant 0 : index
      %c0_61 = arith.constant 0 : index
      %c0_62 = arith.constant 0 : index
      %59 = vector.load %arg8[%c0_60, %c0_61, %c0_62] : memref<2x8x128xf32, #tpu.memory_space<vmem>>, vector<2x8x128xf32>
      %cst_63 = arith.constant dense<0.000000e+00> : vector<2x128xf32>
      %60 = vector.multi_reduction <add>, %59, %cst_63 [1] : vector<2x8x128xf32> to vector<2x128xf32>
      %cst_64 = arith.constant dense<0.000000e+00> : vector<2xf32>
      %61 = vector.multi_reduction <add>, %60, %cst_64 [1] : vector<2x128xf32> to vector<2xf32>
      %62 = vector.shape_cast %61 : vector<2xf32> to vector<2x1xf32>
      %63 = vector.shape_cast %62 : vector<2x1xf32> to vector<1x2x1xf32>
      %c0_65 = arith.constant 0 : index
      %c0_66 = arith.constant 0 : index
      %c3 = arith.constant 3 : index
      %64 = vector.load %arg4[%c0_65, %c0_66, %c3] : memref<1x2x4xf32, #tpu.memory_space<vmem>>, vector<1x2x1xf32>
      tpu.vector_store %arg4[%c0_65, %c0_66, %c3], %63 {strides = array<i32>} : memref<1x2x4xf32, #tpu.memory_space<vmem>>, vector<1x2x1xf32>,
    } else {
    }
    return
  }
  func.func @transform_0(%arg0: i32, %arg1: i32) -> (i32, i32, i32) {
    %c0_i32 = arith.constant 0 : i32
    %c0_i32_0 = arith.constant 0 : i32
    return %arg0, %arg1, %c0_i32 : i32, i32, i32
  }
  func.func @transform_1(%arg0: i32, %arg1: i32) -> (i32, i32, i32) {
    %c0_i32 = arith.constant 0 : i32
    %c0_i32_0 = arith.constant 0 : i32
    return %arg0, %arg1, %c0_i32 : i32, i32, i32
  }
  func.func @transform_2(%arg0: i32, %arg1: i32) -> (i32, i32, i32) {
    %c0_i32 = arith.constant 0 : i32
    %c0_i32_0 = arith.constant 0 : i32
    %c0_i32_1 = arith.constant 0 : i32
    return %arg0, %c0_i32, %c0_i32_0 : i32, i32, i32
  }
}

</mosaic_0001>

<bundles_post_ra>
// kernel: tpu_custom_call.1
= control target key start
LH: loop header
LB: loop body
LE: loop exit
PB: predicated region body
PF: predicated region fallthrough
CT: control target
= control target key end

     0   :  { %7 = vsyncpa [#allocation7], 0  ;;  %s376_s0 = inlined_call_operand.hbm [shape: f32[2,8,128], index: 0, kind: input, shape index: {}]   ;;  %s377_s1 = inlined_call_operand.hbm [shape: f32[2,8,128], index: 1, kind: input, shape index: {}]   ;;  %s378_s2 = inlined_call_operand.hbm [shape: f32[1,2,4], index: 2, kind: output, shape index: {}]  }
   0x1   :  { %8 = vsyncpa [#allocation10], 0 }
   0x2   :  { %9 = vsyncpa [#allocation8], 0  ;;  %s300_s9 = smov [#allocation6]   ;;  %s228_s13 = scalar_lea.hbm %s376_s0, 256 }
   0x3   :  { %s15_s10 = sshll.u32 %s300_s9, 4  ;;  %p229_p0 = scmp.ne.s32.totalorder %s376_s0, %s228_s13  ;;  %s16_s10 = int_to_ptr.vmem [resolvable:$true] %s15_s10 }
   0x4   :  { %p232_p1 = scmp.lt.u32.totalorder %s228_s13, %s376_s0 }
   0x6   :  { %p234_p2 = pnand %p232_p1, %p229_p0 }
   0x8   :  { %237 = shalt.err (!%p234_p2)
}
   0x9   :  { %s238_s18 = scalar_lea.vmem %s16_s10, 256  ;;  %p243_p4 = scmp.lt.s32.totalorder %s16_s10, %s16_s10 }
   0xa   :  { %p239_p3 = scmp.ne.s32.totalorder %s16_s10, %s238_s18  ;;  %p244_p5 = scmp.lt.s32.totalorder %s238_s18, %s238_s18 }
   0xc   :  { %p245_p6 = por %p244_p5, %p243_p4 }
   0xe   :  { %p246_p7 = pnand %p245_p6, %p239_p3 }
  0x10   :  { %249 = shalt.err (!%p246_p7)
}
  0x11   :  { %s301_s19 = smov 128   ;;  %s302_s20 = smov 8  }
  0x12   :  { %21 = dma.hbm_to_vmem [thread:$0]  %s376_s0, 256, %s16_s10, [#allocation7], %s301_s19, %s301_s19, %s302_s20  }
  0x13   :  { %s303_s23 = smov [#allocation9]   ;;  %s250_s27 = scalar_lea.hbm %s377_s1, 256 }
  0x14   :  { %s27_s24 = sshll.u32 %s303_s23, 4  ;;  %p251_p8 = scmp.ne.s32.totalorder %s377_s1, %s250_s27  ;;  %s28_s24 = int_to_ptr.vmem [resolvable:$true] %s27_s24 }
  0x15   :  { %p254_p9 = scmp.lt.u32.totalorder %s250_s27, %s377_s1 }
  0x17   :  { %p256_p10 = pnand %p254_p9, %p251_p8 }
  0x19   :  { %259 = shalt.err (!%p256_p10)
}
  0x1a   :  { %s260_s4 = scalar_lea.vmem %s28_s24, 256  ;;  %p265_p12 = scmp.lt.s32.totalorder %s28_s24, %s28_s24 }
  0x1b   :  { %p261_p11 = scmp.ne.s32.totalorder %s28_s24, %s260_s4  ;;  %p266_p13 = scmp.lt.s32.totalorder %s260_s4, %s260_s4 }
  0x1d   :  { %p267_p0 = por %p266_p13, %p265_p12 }
  0x1f   :  { %p268_p1 = pnand %p267_p0, %p261_p11 }
  0x21   :  { %271 = shalt.err (!%p268_p1)
}
  0x22   :  { %33 = dma.hbm_to_vmem [thread:$0]  %s377_s1, 256, %s28_s24, [#allocation10], %s301_s19, %s301_s19, %s302_s20  }
  0x23   :  { %294 = dma.done.wait [#allocation7], 256  }
  0x24   :  { %295 = vsyncadd [#allocation7], 4294967040 }
  0x25   :  { %296 = dma.done.wait [#allocation10], 256  }
  0x26   :  { %297 = vsyncadd [#allocation10], 4294967040  ;;  %v52_v0 = vld [vmem:[#allocation6] sm:$0xff]  ;;  %v53_v1 = vld [vmem:[#allocation6 + $0x8] sm:$0xff]  ;;  %vm127_vm0 = vcmask 1041409   ;;  %vm130_vm2 = vcmask 1041408  }
  0x27   :  { %v54_v2 = vld [vmem:[#allocation9] sm:$0xff]  ;;  %v55_v3 = vld [vmem:[#allocation9 + $0x8] sm:$0xff]  ;;  %v82_v7 = vmul.f32 %v52_v0, %v52_v0  ;;  %v83_v11 = vmul.f32 %v53_v1, %v53_v1  ;;  %vm134_vm4 = vcmask 1024   ;;  %vm157_vm5 = vcmask 9224   ;;  %s304_s1 = smov [#allocation11]  }
  0x28   :  { %v72_v4 = vmul.f32 %v54_v2, %v52_v0  ;;  %v56_v5 = vsub.f32 %v52_v0, %v54_v2  ;;  %v92_v6 = vmul.f32 %v54_v2, %v54_v2  ;;  %v57_v8 = vsub.f32 %v53_v1, %v55_v3  ;;  %s211_s6 = sshll.u32 %s304_s1, 4  ;;  %s212_s6 = int_to_ptr.vmem [resolvable:$true] %s211_s6 }
  0x29   :  { %v73_v9 = vmul.f32 %v55_v3, %v53_v1  ;;  %v93_v10 = vmul.f32 %v55_v3, %v55_v3  ;;  %v138_v14 = vrot.slane %v82_v7, 4  ;;  %v144_v18 = vrot.slane %v83_v11, 4  ;;  %s272_s7 = scalar_lea.vmem %s212_s6, 32  ;;  %p277_p3 = scmp.lt.s32.totalorder %s212_s6, %s212_s6 }
  0x2a   :  { %v113_v12 = vrot.slane %v72_v4, 4  ;;  %v161_v13 = vrot.slane %v92_v6, 4  ;;  %v58_v15 = vand.u32 2147483647, %v56_v5  ;;  %v59_v19 = vand.u32 2147483647, %v57_v8  ;;  %p273_p2 = scmp.ne.s32.totalorder %s212_s6, %s272_s7  ;;  %p278_p4 = scmp.lt.s32.totalorder %s272_s7, %s272_s7 }
  0x2b   :  { %v119_v16 = vrot.slane %v73_v9, 4  ;;  %v167_v17 = vrot.slane %v93_v10, 4  ;;  %v139_v22 = vadd.f32 %v138_v14, %v82_v7  ;;  %v145_v26 = vadd.f32 %v144_v18, %v83_v11 }
  0x2c   :  { %v114_v20 = vadd.f32 %v113_v12, %v72_v4  ;;  %v162_v21 = vadd.f32 %v161_v13, %v92_v6  ;;  %vm344_vm1 = vcmp.lt.f32.partialorder %v58_v15, 1.0  ;;  %vm348_vm3 = vcmp.lt.f32.partialorder %v59_v19, 1.0  ;;  %p279_p5 = por %p278_p4, %p277_p3 }
  0x2d   :  { %v120_v24 = vadd.f32 %v119_v16, %v73_v9  ;;  %v168_v25 = vadd.f32 %v167_v17, %v93_v10  ;;  %v140_v30 = vrot.slane %v139_v22, 2  ;;  %v62_v31 = vmul.f32 0.5, %v56_v5 }
  0x2e   :  { %v115_v28 = vrot.slane %v114_v20, 2  ;;  %v163_v29 = vrot.slane %v162_v21, 2  ;;  %v146_v34 = vrot.slane %v145_v26, 2  ;;  %v63_v35 = vmul.f32 0.5, %v57_v8  ;;  %p280_p6 = pnand %p279_p5, %p273_p2 }
  0x2f   :  { %v121_v32 = vrot.slane %v120_v24, 2  ;;  %v169_v33 = vrot.slane %v168_v25, 2  ;;  %v141_v38 = vadd.f32 %v140_v30, %v139_v22  ;;  %v64_v39 = vmul.f32 %v62_v31, %v56_v5 }
  0x30   :  { %v116_v36 = vadd.f32 %v115_v28, %v114_v20  ;;  %v164_v37 = vadd.f32 %v163_v29, %v162_v21  ;;  %v147_v42 = vadd.f32 %v146_v34, %v145_v26  ;;  %v65_v43 = vmul.f32 %v63_v35, %v57_v8 }
  0x31   :  { %v122_v40 = vadd.f32 %v121_v32, %v120_v24  ;;  %v170_v41 = vadd.f32 %v169_v33, %v168_v25  ;;  %v142_v46 = vrot.slane %v141_v38, 1  ;;  %v221_v47 = vadd.f32 -0.5, %v58_v15 }
  0x32   :  { %v117_v44 = vrot.slane %v116_v36, 1  ;;  %v165_v45 = vrot.slane %v164_v37, 1  ;;  %v148_v50 = vrot.slane %v147_v42, 1  ;;  %v222_v51 = vadd.f32 -0.5, %v59_v19 }
  0x33   :  { %v123_v48 = vrot.slane %v122_v40, 1  ;;  %v171_v49 = vrot.slane %v170_v41, 1  ;;  %v143_v54 = vadd.f32 %v142_v46, %v141_v38  ;;  %v68_v55 = vsel %vm344_vm1, %v64_v39, %v221_v47 }
  0x34   :  { %v118_v52 = vadd.f32 %v117_v44, %v116_v36  ;;  %v166_v53 = vadd.f32 %v165_v45, %v164_v37  ;;  %v149_v58 = vadd.f32 %v148_v50, %v147_v42  ;;  %v69_v59 = vsel %vm348_vm3, %v65_v43, %v222_v51 }
  0x35   :  { %v124_v56 = vadd.f32 %v123_v48, %v122_v40  ;;  %v172_v57 = vadd.f32 %v171_v49, %v170_v41  ;;  %v184_v60 = vrot.slane %v68_v55, 4  ;;  %v190_v61 = vrot.slane %v69_v59, 4 }
  0x36   :  { %v152_v0 = vsel %vm127_vm0, %v149_v58, %v143_v54  ;;  %vm180_vm6 = vcmask 17424   ;;  %vm203_vm7 = vcmask 25624  }
  0x37   :  { %v128_v62 = vsel %vm127_vm0, %v124_v56, %v118_v52  ;;  %v175_v63 = vsel %vm127_vm0, %v172_v57, %v166_v53  ;;  %v185_v3 = vadd.f32 %v184_v60, %v68_v55  ;;  %v191_v4 = vadd.f32 %v190_v61, %v69_v59 }
  0x38   :  { %v131_v1 = vsel %vm130_vm2, %v128_v62, 0.0  ;;  %v177_v2 = vsel %vm130_vm2, %v175_v63, 0.0  ;;  %v154_v5 = vsel %vm130_vm2, %v152_v0, 0.0 }
  0x39   :  { %132 = vadd.xlane.f32.xlu0 %v131_v1  ;;  %178 = vadd.xlane.f32.xlu1 %v177_v2  ;;  %v186_v6 = vrot.slane %v185_v3, 2  ;;  %v192_v7 = vrot.slane %v191_v4, 2 }
  0x3b   :  { %v187_v8 = vadd.f32 %v186_v6, %v185_v3  ;;  %v193_v9 = vadd.f32 %v192_v7, %v191_v4 }
  0x3d   :  { %155 = vadd.xlane.f32.xlu0 %v154_v5  ;;  %v188_v10 = vrot.slane %v187_v8, 1  ;;  %v194_v11 = vrot.slane %v193_v9, 1 }
  0x3f   :  { %v189_v12 = vadd.f32 %v188_v10, %v187_v8  ;;  %v195_v13 = vadd.f32 %v194_v11, %v193_v9 }
  0x41   :  { %v198_v14 = vsel %vm127_vm0, %v195_v13, %v189_v12 }
  0x42   :  { %v200_v15 = vsel %vm130_vm2, %v198_v14, 0.0 }
  0x43   :  { %201 = vadd.xlane.f32.xlu1 %v200_v15 }
  0xc6   :  { %v133_v16 = vpop.xlane.xlu0 %132  ;;  %v179_v18 = vpop.xlane.xlu1 %178 }
  0xc7   :  { %135 = vst.msk [vmem:[#allocation11] sm:$0x3] %vm134_vm4, %v133_v16 }
  0xca   :  { %v156_v17 = vpop.xlane.xlu0 %155 }
  0xcb   :  { %158 = vst.msk [vmem:[#allocation11] sm:$0x3] %vm157_vm5, %v156_v17 }
  0xcc   :  { %181 = vst.msk [vmem:[#allocation11] sm:$0x3] %vm180_vm6, %v179_v18 }
  0xd0   :  { %v202_v19 = vpop.xlane.xlu1 %201 }
  0xd1   :  { %204 = vst.msk [vmem:[#allocation11] sm:$0x3] %vm203_vm7, %v202_v19 }
  0xd2   :  { %283 = shalt.err (!%p280_p6)
}
  0xd3   :  { %s284_s10 = scalar_lea.hbm %s378_s2, 32 }
  0xd4   :  { %p285_p7 = scmp.ne.s32.totalorder %s378_s2, %s284_s10  ;;  %p288_p8 = scmp.lt.u32.totalorder %s284_s10, %s378_s2 }
  0xd6   :  { %p290_p9 = pnand %p288_p8, %p285_p7 }
  0xd8   :  { %293 = shalt.err (!%p290_p9)
}
  0xd9   :  { %214 = dma.vmem_to_hbm [thread:$0]  %s212_s6, 32, %s378_s2, [#allocation8]  }
  0xda   :  { %298 = dma.done.wait [#allocation8], 32  }
  0xdb   :  { %299 = vsyncadd [#allocation8], 4294967264 }
  0xdc   :  { %218 = vsyncpa [#allocation7], 1 }
  0xdd   :  { %219 = vsyncpa [#allocation10], 1 }
  0xde   :  { %220 = vsyncpa [#allocation8], 1 }

</bundles_post_ra>
